<compile_context>
chip_gen: v5e
topology: v5e:2x2
jax: 0.10.0
libtpu: 0.0.40
codegen_flags: <defaults>
</compile_context>

<pallas_src>
import jax
import jax.numpy as jnp
from jax.experimental import pallas as pl
from jax.experimental.pallas import tpu as pltpu

_LANE = 128


def _round_up(n, m):
    return ((n + m - 1) // m) * m


# ----------------------------------------------------------------------------
# Fused kernel (built per static layer-count / class-count)
# ----------------------------------------------------------------------------
def _make_fused_gnn_kernel(n_sage, n_classes):
    """refs = (A_counts, inv_deg, X, [Wcat_i, b_i] * n_sage, W_lin, b_lin, out)."""

    def kernel(*refs):
        a = refs[0][...]            # [Np, Np]  bf16 edge counts (exact integers)
        inv_deg = refs[1][...]      # [Np, 1]   f32  1 / max(deg, 1)
        h = refs[2][...]            # [Np, C0]  bf16 node features
        o_ref = refs[-1]            # [Np, Ccls_pad] f32

        idx = 3
        for _ in range(n_sage):
            wcat = refs[idx][...]       # [2*Cin, Cout] bf16 (top = lin_l, bottom = lin_r)
            b = refs[idx + 1][...]      # [1, Cout] f32
            idx += 2
            # mean aggregation: (counts @ h) * 1/deg, accumulated in f32 on the MXU
            agg = jnp.dot(a, h, preferred_element_type=jnp.float32) * inv_deg
            # single matmul for both SAGE branches: [agg | h] @ [Wl ; Wr]
            cat = jnp.concatenate([agg.astype(jnp.bfloat16), h], axis=-1)
            out = jnp.dot(cat, wcat, preferred_element_type=jnp.float32) + b
            # ReLU (dropout is identity in eval mode)
            h = jnp.maximum(out, 0.0).astype(jnp.bfloat16)

        w_lin = refs[idx][...]          # [Chid, Ccls_pad] bf16
        b_lin = refs[idx + 1][...]      # [1, Ccls_pad]    f32
        logits = jnp.dot(h, w_lin, preferred_element_type=jnp.float32) + b_lin

        # mask padded class columns so log_softmax runs over the real classes only
        col = jax.lax.broadcasted_iota(jnp.int32, logits.shape, 1)
        logits = jnp.where(col < n_classes, logits, -1e30)

        m = jnp.max(logits, axis=1, keepdims=True)
        z = logits - m
        lse = jnp.log(jnp.sum(jnp.exp(z), axis=1, keepdims=True))
        o_ref[...] = z - lse

    return kernel


# ----------------------------------------------------------------------------
# Wrapper: pad to lane-dense shapes, build adjacency, one pallas_call
# ----------------------------------------------------------------------------
def _pad2(x, rows, cols, dtype):
    out = jnp.zeros((rows, cols), dtype)
    return out.at[: x.shape[0], : x.shape[1]].set(x.astype(dtype))


@jax.jit
def base_gnn_forward(x, edge_index, sage_params, lin_params):
    """Fused BaseGNN forward (eval mode, linear=True). Returns [N, n_classes] f32."""
    x = x.astype(jnp.float32)
    n, c_in = x.shape
    w_lin, b_lin = lin_params
    n_classes = w_lin.shape[1]

    np_ = _round_up(n, _LANE)
    c0 = _round_up(c_in, _LANE)
    c_cls = _round_up(n_classes, _LANE)

    # Dense adjacency counts A[i, j] = #edges j -> i (duplicates counted, like PyG)
    src, dst = edge_index[0], edge_index[1]
    counts = jnp.zeros((np_, np_), jnp.float32).at[dst, src].add(1.0)
    inv_deg = 1.0 / jnp.maximum(jnp.sum(counts, axis=1, keepdims=True), 1.0)
    counts_bf16 = counts.astype(jnp.bfloat16)   # small integer counts: exact in bf16

    x_p = _pad2(x, np_, c0, jnp.bfloat16)

    inputs = [counts_bf16, inv_deg, x_p]
    flops = 0
    bytes_accessed = counts_bf16.size * 2 + inv_deg.size * 4 + x_p.size * 2

    c_prev = c0
    for wl, wr, b in sage_params:
        c_out = _round_up(wl.shape[1], _LANE)
        wcat = jnp.concatenate(
            [_pad2(wl, c_prev, c_out, jnp.bfloat16),
             _pad2(wr, c_prev, c_out, jnp.bfloat16)],
            axis=0,
        )                                   # [2*c_prev, c_out]
        b_p = _pad2(b, 1, c_out, jnp.float32)
        inputs += [wcat, b_p]
        flops += 2 * np_ * np_ * c_prev             # A @ h
        flops += 2 * np_ * (2 * c_prev) * c_out     # [agg | h] @ Wcat
        bytes_accessed += wcat.size * 2 + b_p.size * 4
        c_prev = c_out

    w_p = _pad2(w_lin, c_prev, c_cls, jnp.bfloat16)
    b_p = _pad2(b_lin, 1, c_cls, jnp.float32)
    inputs += [w_p, b_p]
    flops += 2 * np_ * c_prev * c_cls
    bytes_accessed += w_p.size * 2 + b_p.size * 4 + np_ * c_cls * 4

    kernel = _make_fused_gnn_kernel(len(sage_params), n_classes)
    vmem_spec = pl.BlockSpec(memory_space=pltpu.MemorySpace.VMEM)

    out_padded = pl.pallas_call(
        kernel,
        out_shape=jax.ShapeDtypeStruct((np_, c_cls), jnp.float32),
        in_specs=[vmem_spec] * len(inputs),
        out_specs=vmem_spec,
        compiler_params=pltpu.CompilerParams(vmem_limit_bytes=32 * 1024 * 1024),
        cost_estimate=pl.CostEstimate(
            flops=flops,
            transcendentals=np_ * c_cls,
            bytes_accessed=bytes_accessed,
        ),
    )(*inputs)

    return out_padded[:n, :n_classes]


# ----------------------------------------------------------------------------
# Pure-JAX f32 reference (module semantics) + deterministic synthetic params
# ----------------------------------------------------------------------------
def base_gnn_reference(x, edge_index, sage_params, lin_params):
    x = x.astype(jnp.float32)
    n = x.shape[0]
    src, dst = edge_index[0], edge_index[1]
    adj = jnp.zeros((n, n), jnp.float32).at[dst, src].add(1.0)
    a = adj / jnp.maximum(jnp.sum(adj, axis=1, keepdims=True), 1.0)
    for wl, wr, b in sage_params:
        x = jnp.maximum((a @ x) @ wl + x @ wr + b, 0.0)
    w, b = lin_params
    logits = x @ w + b
    return jax.nn.log_softmax(logits, axis=1)


def init_base_gnn_params(key, input_size, output_size, hidden_size, n_hidden_layers):
    """Deterministic synthetic init mirroring BaseGNN.__init__ layer shapes."""
    layers_size = [input_size] + [hidden_size] * (n_hidden_layers + 1) + [output_size]
    sage_params = []
    lin_params = None
    for i in range(len(layers_size) - 1):
        cin, cout = layers_size[i], layers_size[i + 1]
        key, k1, k2, k3 = jax.random.split(key, 4)
        scale = 1.0 / jnp.sqrt(jnp.float32(cin))
        if i < len(layers_size) - 2:   # SAGEConv(cin, cout)
            wl = jax.random.uniform(k1, (cin, cout), jnp.float32, -scale, scale)
            wr = jax.random.uniform(k2, (cin, cout), jnp.float32, -scale, scale)
            b = jax.random.uniform(k3, (1, cout), jnp.float32, -scale, scale)
            sage_params.append((wl, wr, b))
        else:                          # nn.Linear(cin, cout)
            w = jax.random.uniform(k1, (cin, cout), jnp.float32, -scale, scale)
            b = jax.random.uniform(k2, (1, cout), jnp.float32, -scale, scale)
            lin_params = (w, b)
    return tuple(sage_params), lin_params


# ----------------------------------------------------------------------------
if __name__ == "__main__":
    N = 32            # number of nodes
    INPUT_SIZE = 16
    HIDDEN_SIZE = 32
    OUTPUT_SIZE = 8
    N_HIDDEN_LAYERS = 1
    NUM_EDGES = 64

    key = jax.random.PRNGKey(0)
    k_x, k_src, k_dst, k_params = jax.random.split(key, 4)

    x = jax.random.normal(k_x, (N, INPUT_SIZE), jnp.float32)
    edge_index = jnp.stack(
        [
            jax.random.randint(k_src, (NUM_EDGES,), 0, N),
            jax.random.randint(k_dst, (NUM_EDGES,), 0, N),
        ],
        axis=0,
    )  # [2, NUM_EDGES], row 0 = source, row 1 = target (PyG convention)

    sage_params, lin_params = init_base_gnn_params(
        k_params, INPUT_SIZE, OUTPUT_SIZE, HIDDEN_SIZE, N_HIDDEN_LAYERS
    )

    out = base_gnn_forward(x, edge_index, sage_params, lin_params)
    out = jax.block_until_ready(out)

    ref = base_gnn_reference(x, edge_index, sage_params, lin_params)
    assert out.shape == (N, OUTPUT_SIZE)
    # bf16 MXU operands with f32 accumulation: bf16-level tolerance vs f32 reference
    assert jnp.allclose(out, ref, atol=5e-2, rtol=5e-2), "mismatch vs reference"

    print("KERNEL_OK")
</pallas_src>

<mosaic_0001>
module attributes {stable_mosaic.version = 11 : i64} {
  func.func @kernel(%arg0: memref<128x128xbf16, #tpu.memory_space<vmem>>, %arg1: memref<128x1xf32, #tpu.memory_space<vmem>>, %arg2: memref<128x128xbf16, #tpu.memory_space<vmem>>, %arg3: memref<256x128xbf16, #tpu.memory_space<vmem>>, %arg4: memref<1x128xf32, #tpu.memory_space<vmem>>, %arg5: memref<256x128xbf16, #tpu.memory_space<vmem>>, %arg6: memref<1x128xf32, #tpu.memory_space<vmem>>, %arg7: memref<128x128xbf16, #tpu.memory_space<vmem>>, %arg8: memref<1x128xf32, #tpu.memory_space<vmem>>, %arg9: memref<128x128xf32, #tpu.memory_space<vmem>>) attributes {dimension_semantics = [], scalar_prefetch = 0 : i64, scratch_operands = 0 : i64, tpu.core_type = #tpu.core_type<tc>} {
    %c0 = arith.constant 0 : index
    %c0_0 = arith.constant 0 : index
    %0 = vector.load %arg0[%c0, %c0_0] : memref<128x128xbf16, #tpu.memory_space<vmem>>, vector<128x128xbf16>
    %c0_1 = arith.constant 0 : index
    %c0_2 = arith.constant 0 : index
    %1 = vector.load %arg1[%c0_1, %c0_2] : memref<128x1xf32, #tpu.memory_space<vmem>>, vector<128x1xf32>
    %c0_3 = arith.constant 0 : index
    %c0_4 = arith.constant 0 : index
    %2 = vector.load %arg2[%c0_3, %c0_4] : memref<128x128xbf16, #tpu.memory_space<vmem>>, vector<128x128xbf16>
    %c0_5 = arith.constant 0 : index
    %c0_6 = arith.constant 0 : index
    %3 = vector.load %arg3[%c0_5, %c0_6] : memref<256x128xbf16, #tpu.memory_space<vmem>>, vector<256x128xbf16>
    %c0_7 = arith.constant 0 : index
    %c0_8 = arith.constant 0 : index
    %4 = vector.load %arg4[%c0_7, %c0_8] : memref<1x128xf32, #tpu.memory_space<vmem>>, vector<1x128xf32>
    %cst = arith.constant dense<0.000000e+00> : vector<128x128xf32>
    %5 = tpu.matmul %0, %2, %cst {dimension_numbers = #tpu.dot_dimension_numbers<[1], [0], [0], [1], [0, 0, 1, 1], [], []>} : vector<128x128xbf16>, vector<128x128xbf16>, vector<128x128xf32> -> vector<128x128xf32>
    %6 = vector.broadcast %1 : vector<128x1xf32> to vector<128x128xf32>
    %7 = arith.mulf %5, %6 : vector<128x128xf32>
    %8 = arith.truncf %7 : vector<128x128xf32> to vector<128x128xbf16>
    %9 = tpu.concatenate %8, %2 in 1 : vector<128x128xbf16>, vector<128x128xbf16> -> vector<128x256xbf16>
    %cst_9 = arith.constant dense<0.000000e+00> : vector<128x128xf32>
    %10 = tpu.matmul %9, %3, %cst_9 {dimension_numbers = #tpu.dot_dimension_numbers<[1], [0], [0], [1], [0, 0, 1, 1], [], []>} : vector<128x256xbf16>, vector<256x128xbf16>, vector<128x128xf32> -> vector<128x128xf32>
    %11 = vector.broadcast %4 : vector<1x128xf32> to vector<128x128xf32>
    %12 = arith.addf %10, %11 : vector<128x128xf32>
    %cst_10 = arith.constant 0.000000e+00 : f32
    %13 = vector.broadcast %cst_10 : f32 to vector<128x128xf32>
    %14 = arith.maximumf %12, %13 : vector<128x128xf32>
    %15 = arith.truncf %14 : vector<128x128xf32> to vector<128x128xbf16>
    %c0_11 = arith.constant 0 : index
    %c0_12 = arith.constant 0 : index
    %16 = vector.load %arg5[%c0_11, %c0_12] : memref<256x128xbf16, #tpu.memory_space<vmem>>, vector<256x128xbf16>
    %c0_13 = arith.constant 0 : index
    %c0_14 = arith.constant 0 : index
    %17 = vector.load %arg6[%c0_13, %c0_14] : memref<1x128xf32, #tpu.memory_space<vmem>>, vector<1x128xf32>
    %cst_15 = arith.constant dense<0.000000e+00> : vector<128x128xf32>
    %18 = tpu.matmul %0, %15, %cst_15 {dimension_numbers = #tpu.dot_dimension_numbers<[1], [0], [0], [1], [0, 0, 1, 1], [], []>} : vector<128x128xbf16>, vector<128x128xbf16>, vector<128x128xf32> -> vector<128x128xf32>
    %19 = vector.broadcast %1 : vector<128x1xf32> to vector<128x128xf32>
    %20 = arith.mulf %18, %19 : vector<128x128xf32>
    %21 = arith.truncf %20 : vector<128x128xf32> to vector<128x128xbf16>
    %22 = tpu.concatenate %21, %15 in 1 : vector<128x128xbf16>, vector<128x128xbf16> -> vector<128x256xbf16>
    %cst_16 = arith.constant dense<0.000000e+00> : vector<128x128xf32>
    %23 = tpu.matmul %22, %16, %cst_16 {dimension_numbers = #tpu.dot_dimension_numbers<[1], [0], [0], [1], [0, 0, 1, 1], [], []>} : vector<128x256xbf16>, vector<256x128xbf16>, vector<128x128xf32> -> vector<128x128xf32>
    %24 = vector.broadcast %17 : vector<1x128xf32> to vector<128x128xf32>
    %25 = arith.addf %23, %24 : vector<128x128xf32>
    %cst_17 = arith.constant 0.000000e+00 : f32
    %26 = vector.broadcast %cst_17 : f32 to vector<128x128xf32>
    %27 = arith.maximumf %25, %26 : vector<128x128xf32>
    %28 = arith.truncf %27 : vector<128x128xf32> to vector<128x128xbf16>
    %c0_18 = arith.constant 0 : index
    %c0_19 = arith.constant 0 : index
    %29 = vector.load %arg7[%c0_18, %c0_19] : memref<128x128xbf16, #tpu.memory_space<vmem>>, vector<128x128xbf16>
    %c0_20 = arith.constant 0 : index
    %c0_21 = arith.constant 0 : index
    %30 = vector.load %arg8[%c0_20, %c0_21] : memref<1x128xf32, #tpu.memory_space<vmem>>, vector<1x128xf32>
    %cst_22 = arith.constant dense<0.000000e+00> : vector<128x128xf32>
    %31 = tpu.matmul %28, %29, %cst_22 {dimension_numbers = #tpu.dot_dimension_numbers<[1], [0], [0], [1], [0, 0, 1, 1], [], []>} : vector<128x128xbf16>, vector<128x128xbf16>, vector<128x128xf32> -> vector<128x128xf32>
    %32 = vector.broadcast %30 : vector<1x128xf32> to vector<128x128xf32>
    %33 = arith.addf %31, %32 : vector<128x128xf32>
    %34 = tpu.iota {dimensions = array<i32: 1>} : vector<128x128xi32>
    %c8_i32 = arith.constant 8 : i32
    %35 = vector.broadcast %c8_i32 : i32 to vector<128x128xi32>
    %36 = arith.cmpi slt, %34, %35 : vector<128x128xi32>
    %cst_23 = arith.constant -1.000000e+30 : f32
    %37 = vector.broadcast %cst_23 : f32 to vector<128x128xf32>
    %38 = arith.select %36, %33, %37 : vector<128x128xi1>, vector<128x128xf32>
    %cst_24 = arith.constant dense<0xFF800000> : vector<128xf32>
    %39 = vector.multi_reduction <maximumf>, %38, %cst_24 [1] : vector<128x128xf32> to vector<128xf32>
    %40 = vector.shape_cast %39 : vector<128xf32> to vector<128x1xf32>
    %41 = vector.broadcast %40 : vector<128x1xf32> to vector<128x128xf32>
    %42 = arith.subf %38, %41 : vector<128x128xf32>
    %43 = math.exp %42 : vector<128x128xf32>
    %cst_25 = arith.constant dense<0.000000e+00> : vector<128xf32>
    %44 = vector.multi_reduction <add>, %43, %cst_25 [1] : vector<128x128xf32> to vector<128xf32>
    %45 = vector.shape_cast %44 : vector<128xf32> to vector<128x1xf32>
    %46 = math.log %45 : vector<128x1xf32>
    %47 = vector.broadcast %46 : vector<128x1xf32> to vector<128x128xf32>
    %48 = arith.subf %42, %47 : vector<128x128xf32>
    %c0_26 = arith.constant 0 : index
    %c0_27 = arith.constant 0 : index
    %49 = vector.load %arg9[%c0_26, %c0_27] : memref<128x128xf32, #tpu.memory_space<vmem>>, vector<128x128xf32>
    tpu.vector_store %arg9[%c0_26, %c0_27], %48 {strides = array<i32>} : memref<128x128xf32, #tpu.memory_space<vmem>>, vector<128x128xf32>,
    return
  }
}

</mosaic_0001>

<bundles_post_ra>
// kernel: base_gnn_forward.1
= control target key start
LH: loop header
LB: loop body
LE: loop exit
PB: predicated region body
PF: predicated region fallthrough
CT: control target
= control target key end

     0   :  { %v1769_v1 = vmov 0   ;;  %s2469_s2 = inlined_call_operand.vmem [shape: bf16[128,128], index: 2, kind: input, shape index: {}]   ;;  %s2470_s1 = inlined_call_operand.vmem [shape: f32[128,1], index: 1, kind: input, shape index: {}]   ;;  %s2471_s0 = inlined_call_operand.vmem [shape: bf16[128,128], index: 0, kind: input, shape index: {}]   ;;  %s2472_s3 = inlined_call_operand.vmem [shape: bf16[256,128], index: 3, kind: input, shape index: {}]   ;;  %s2473_s4 = inlined_call_operand.vmem [shape: f32[1,128], index: 4, kind: input, shape index: {}]   ;;  %s2474_s5 = inlined_call_operand.vmem [shape: bf16[256,128], index: 5, kind: input, shape index: {}]   ;;  %s2475_s6 = inlined_call_operand.vmem [shape: f32[1,128], index: 6, kind: input, shape index: {}]   ;;  %s2476_s7 = inlined_call_operand.vmem [shape: bf16[128,128], index: 7, kind: input, shape index: {}]   ;;  %s2477_s8 = inlined_call_operand.vmem [shape: f32[1,128], index: 8, kind: input, shape index: {}]   ;;  %s2478_s9 = inlined_call_operand.vmem [shape: f32[128,128], index: 9, kind: output, shape index: {}]  }
   0x1   :  { %v1823_v0 = vld [vmem:[%s2469_s2 + $0x38] sm:$0xff]  ;;  %1699 = vset.pattern.permute.xlu0 %v1769_v1  ;;  %1700 = vset.pattern.permute.xlu1 %v1769_v1  ;;  %v52_v2 = vld [vmem:[%s2470_s1 + $0x20] sm:$0xff]  ;;  %v1833_v3 = vld [vmem:[%s2469_s2 + $0x30] sm:$0xff] }
   0x2   :  { %1701 = vset.pattern.permute.xlu2 %v1769_v1  ;;  %209 = vmatpush.bf16.msra.mxu0 %v1823_v0  ;;  %v54_v4 = vld [vmem:[%s2470_s1 + $0x30] sm:$0xff]  ;;  %v1843_v5 = vld [vmem:[%s2469_s2 + $0x28] sm:$0xff]  ;;  %v1853_v7 = vld [vmem:[%s2469_s2 + $0x20] sm:$0xff] }
   0x3   :  { %1674 = vmatpush.bf16.msra.mxu3 %v1823_v0  ;;  %280 = vperm.xlu0 %1699, %v52_v2   ;;  %v53_v6 = vld [vmem:[%s2470_s1 + $0x28] sm:$0xff]  ;;  %v55_v8 = vld [vmem:[%s2470_s1 + $0x38] sm:$0xff]  ;;  %v58_v10 = vld [vmem:[%s2470_s1 + $0x50] sm:$0xff] }
   0x4   :  { %290 = vperm.xlu1 %1700, %v54_v4   ;;  %v1863_v9 = vld [vmem:[%s2469_s2 + $0x18] sm:$0xff]  ;;  %v1873_v11 = vld [vmem:[%s2469_s2 + $0x10] sm:$0xff]  ;;  %v56_v13 = vld [vmem:[%s2470_s1 + $0x40] sm:$0xff] }
   0x5   :  { %v59_v12 = vld [vmem:[%s2470_s1 + $0x58] sm:$0xff]  ;;  %300 = vperm.xlu2 %1701, %v56_v13   ;;  %v1886_v14 = vld [vmem:[%s2469_s2 + $0x8] sm:$0xff]  ;;  %v1896_v16 = vld [vmem:[%s2469_s2] sm:$0xff] }
   0x6   :  { %210 = vmatpush.bf16.msra.mxu0 %v1833_v3  ;;  %v49_v15 = vld [vmem:[%s2470_s1 + $0x8] sm:$0xff]  ;;  %v60_v17 = vld [vmem:[%s2470_s1 + $0x60] sm:$0xff]  ;;  %v1909_v19 = vld [vmem:[%s2471_s0 + $0x10] sm:$0xff] }
   0x7   :  { %1675 = vmatpush.bf16.msra.mxu3 %v1833_v3  ;;  %v1904_v18 = vld [vmem:[%s2471_s0] sm:$0xff]  ;;  %v50_v20 = vld [vmem:[%s2470_s1 + $0x10] sm:$0xff]  ;;  %v57_v21 = vld [vmem:[%s2470_s1 + $0x48] sm:$0xff] }
   0x8   :  { %v51_v22 = vld [vmem:[%s2470_s1 + $0x18] sm:$0xff]  ;;  %v48_v23 = vld [vmem:[%s2470_s1] sm:$0xff]  ;;  %v1933_v25 = vld [vmem:[%s2471_s0 + $0x8] sm:$0xff] }
   0x9   :  { %v63_v24 = vld [vmem:[%s2470_s1 + $0x78] sm:$0xff]  ;;  %v1945_v27 = vld [vmem:[%s2471_s0 + $0x20] sm:$0xff]  ;;  %v61_v28 = vld [vmem:[%s2470_s1 + $0x68] sm:$0xff] }
   0xa   :  { %211 = vmatpush.bf16.msra.mxu0 %v1843_v5  ;;  %v1938_v26 = vld [vmem:[%s2471_s0 + $0x18] sm:$0xff]  ;;  %v62_v29 = vld [vmem:[%s2470_s1 + $0x70] sm:$0xff]  ;;  %v1957_v30 = vld [vmem:[%s2471_s0 + $0x28] sm:$0xff] }
   0xb   :  { %1676 = vmatpush.bf16.msra.mxu3 %v1843_v5  ;;  %285 = vperm.xlu0 %1699, %v53_v6   ;;  %v1963_v31 = vld [vmem:[%s2471_s0 + $0x30] sm:$0xff]  ;;  %v1649_v32 = vld [vmem:[%s2472_s3 + $0x78] sm:$0xff]  ;;  %v1647_v35 = vld [vmem:[%s2472_s3 + $0x68] sm:$0xff] }
   0xc   :  { %295 = vperm.xlu1 %1700, %v55_v8   ;;  %1690 = vmatpush.bf16.msra.mxu2 %v1649_v32  ;;  %v1648_v33 = vld [vmem:[%s2472_s3 + $0x70] sm:$0xff]  ;;  %v1641_v34 = vld [vmem:[%s2472_s3 + $0x38] sm:$0xff]  ;;  %v1646_v38 = vld [vmem:[%s2472_s3 + $0x60] sm:$0xff] }
   0xd   :  { %305 = vperm.xlu2 %1701, %v57_v21   ;;  %v1640_v36 = vld [vmem:[%s2472_s3 + $0x30] sm:$0xff]  ;;  %1682 = vmatpush.bf16.msra.mxu1 %v1641_v34  ;;  %v1984_v37 = vld [vmem:[%s2471_s0 + $0x38] sm:$0xff]  ;;  %v1639_v39 = vld [vmem:[%s2472_s3 + $0x28] sm:$0xff] }
   0xe   :  { %212 = vmatpush.bf16.msra.mxu0 %v1853_v7  ;;  %v1645_v40 = vld [vmem:[%s2472_s3 + $0x58] sm:$0xff]  ;;  %v1638_v41 = vld [vmem:[%s2472_s3 + $0x20] sm:$0xff]  ;;  %v1644_v42 = vld [vmem:[%s2472_s3 + $0x50] sm:$0xff] }
   0xf   :  { %1677 = vmatpush.bf16.msra.mxu3 %v1853_v7  ;;  %v1637_v43 = vld [vmem:[%s2472_s3 + $0x18] sm:$0xff]  ;;  %v1643_v44 = vld [vmem:[%s2472_s3 + $0x48] sm:$0xff]  ;;  %v1636_v45 = vld [vmem:[%s2472_s3 + $0x10] sm:$0xff] }
  0x10   :  { %1691 = vmatpush.bf16.msra.mxu2 %v1648_v33  ;;  %v1642_v46 = vld [vmem:[%s2472_s3 + $0x40] sm:$0xff]  ;;  %v1635_v47 = vld [vmem:[%s2472_s3 + $0x8] sm:$0xff] }
  0x11   :  { %1683 = vmatpush.bf16.msra.mxu1 %v1640_v36  ;;  %v1634_v50 = vld [vmem:[%s2472_s3] sm:$0xff] }
  0x12   :  { %213 = vmatpush.bf16.msra.mxu0 %v1863_v9 }
  0x13   :  { %1678 = vmatpush.bf16.msra.mxu3 %v1863_v9  ;;  %310 = vperm.xlu0 %1699, %v58_v10  }
  0x14   :  { %315 = vperm.xlu1 %1700, %v59_v12   ;;  %1692 = vmatpush.bf16.msra.mxu2 %v1647_v35 }
  0x15   :  { %260 = vperm.xlu2 %1701, %v48_v23   ;;  %1684 = vmatpush.bf16.msra.mxu1 %v1639_v39 }
  0x16   :  { %214 = vmatpush.bf16.msra.mxu0 %v1873_v11 }
  0x17   :  { %1679 = vmatpush.bf16.msra.mxu3 %v1873_v11 }
  0x18   :  { %1693 = vmatpush.bf16.msra.mxu2 %v1646_v38 }
  0x19   :  { %1685 = vmatpush.bf16.msra.mxu1 %v1638_v41 }
  0x1a   :  { %215 = vmatpush.bf16.msra.mxu0 %v1886_v14 }
  0x1b   :  { %1680 = vmatpush.bf16.msra.mxu3 %v1886_v14  ;;  %265 = vperm.xlu0 %1699, %v49_v15  }
  0x1c   :  { %320 = vperm.xlu1 %1700, %v60_v17   ;;  %1694 = vmatpush.bf16.msra.mxu2 %v1645_v40 }
  0x1d   :  { %325 = vperm.xlu2 %1701, %v61_v28   ;;  %1686 = vmatpush.bf16.msra.mxu1 %v1637_v43 }
  0x1e   :  { %216 = vmatpush.bf16.msra.mxu0 %v1896_v16 }
  0x1f   :  { %1681 = vmatpush.bf16.msra.mxu3 %v1896_v16 }
  0x20   :  { %1695 = vmatpush.bf16.msra.mxu2 %v1644_v42 }
  0x21   :  { %217 = vmatmul.bf16.vlgmr.msra.gmra.mxu0 %v1904_v18  ;;  %1687 = vmatpush.bf16.msra.mxu1 %v1636_v45 }
  0x22   :  { %227 = vmatmul.bf16.vlgmr.msra.gmra.mxu3 %v1909_v19  ;;  %517 = vmatpush.bf16.msrb.mxu0 %v1641_v34 }
  0x23   :  { %270 = vperm.xlu0 %1699, %v50_v20  }
  0x24   :  { %275 = vperm.xlu1 %1700, %v51_v22   ;;  %1696 = vmatpush.bf16.msra.mxu2 %v1643_v44 }
  0x25   :  { %330 = vperm.xlu2 %1701, %v62_v29   ;;  %1688 = vmatpush.bf16.msra.mxu1 %v1635_v47 }
  0x26   :  { %518 = vmatpush.bf16.msrb.mxu0 %v1640_v36 }
  0x28   :  { %1697 = vmatpush.bf16.msra.mxu2 %v1642_v46 }
  0x29   :  { %1689 = vmatpush.bf16.msra.mxu1 %v1634_v50 }
  0x2a   :  { %519 = vmatpush.bf16.msrb.mxu0 %v1639_v39 }
  0x2b   :  { %335 = vperm.xlu0 %1699, %v63_v24   ;;  %584 = vmatmul.bf16.vlgmr.msra.gmra.mxu2 %v1873_v11 }
  0x2e   :  { %520 = vmatpush.bf16.msrb.mxu0 %v1638_v41 }
  0x31   :  { %222 = vmatmul.bf16.gmra.mxu0 %v1933_v25 }
  0x32   :  { %232 = vmatmul.bf16.gmra.mxu3 %v1938_v26  ;;  %521 = vmatpush.bf16.msrb.mxu0 %v1637_v43 }
  0x36   :  { %522 = vmatpush.bf16.msrb.mxu0 %v1636_v45 }
  0x3a   :  { %523 = vmatpush.bf16.msrb.mxu0 %v1635_v47 }
  0x3b   :  { %589 = vmatmul.bf16.gmra.mxu2 %v1863_v9 }
  0x3e   :  { %524 = vmatpush.bf16.msrb.mxu0 %v1634_v50 }
  0x42   :  { %237 = vmatmul.bf16.gmra.mxu3 %v1945_v27  ;;  %566 = vmatpush.bf16.msra.mxu0 %v1649_v32 }
  0x46   :  { %567 = vmatpush.bf16.msra.mxu0 %v1648_v33 }
  0x4a   :  { %568 = vmatpush.bf16.msra.mxu0 %v1647_v35 }
  0x4b   :  { %594 = vmatmul.bf16.gmra.mxu2 %v1853_v7 }
  0x4e   :  { %569 = vmatpush.bf16.msra.mxu0 %v1646_v38 }
  0x52   :  { %242 = vmatmul.bf16.gmra.mxu3 %v1957_v30  ;;  %570 = vmatpush.bf16.msra.mxu0 %v1645_v40 }
  0x56   :  { %571 = vmatpush.bf16.msra.mxu0 %v1644_v42 }
  0x5a   :  { %572 = vmatpush.bf16.msra.mxu0 %v1643_v44 }
  0x5b   :  { %599 = vmatmul.bf16.gmra.mxu2 %v1843_v5 }
  0x5e   :  { %573 = vmatpush.bf16.msra.mxu0 %v1642_v46 }
  0x5f   :  { %v2020_v49 = vpop.permute.xlu2 %300 }
  0x62   :  { %247 = vmatmul.bf16.gmra.mxu3 %v1963_v31 }
  0x67   :  { %v2029_v53 = vpop.permute.xlu2 %305 }
  0x6b   :  { %604 = vmatmul.bf16.gmra.mxu2 %v1833_v3 }
  0x6f   :  { %v2036_v57 = vpop.permute.xlu2 %260 }
  0x72   :  { %252 = vmatmul.bf16.gmra.mxu3 %v1984_v37 }
  0x75   :  { %v2017_v48 = vpop.permute.xlu0 %280 }
  0x76   :  { %v2025_v51 = vpop.permute.xlu1 %290 }
  0x7b   :  { %609 = vmatmul.bf16.gmra.mxu2 %v1823_v0 }
  0x7d   :  { %v2027_v52 = vpop.permute.xlu0 %285 }
  0x7e   :  { %v2031_v54 = vpop.permute.xlu1 %295 }
  0x85   :  { %v2034_v55 = vpop.permute.xlu0 %310 }
  0x86   :  { %v2039_v59 = vpop.permute.xlu1 %315 }
  0x8d   :  { %v2041_v62 = vpop.permute.xlu0 %265 }
  0x8e   :  { %v2046_v9 = vpop.permute.xlu1 %320 }
  0x95   :  { %v2049_v22 = vpop.permute.xlu0 %270 }
  0x96   :  { %v2052_v28 = vpop.permute.xlu1 %275 }
  0x9e   :  { %v218_v56 = vpop.f32.mrf.mxu0 }
  0x9f   :  { %v338_v58 = vmul.f32 %v2036_v57, %v218_v56 }
  0xa1   :  { %v354_v61 = vpack.c.bf16 %v338_v58, %v338_v58 }
  0xa3   :  { %v386_v4 = vunpack.c.l.b16 %v354_v61 }
  0xa5   :  { %v228_v60 = vpop.f32.mrf.mxu3 }
  0xa6   :  { %v220_v63 = vpop.f32.mrf.mxu0  ;;  %v342_v2 = vmul.f32 %v2017_v48, %v228_v60 }
  0xa7   :  { %v339_v1 = vmul.f32 %v2041_v62, %v220_v63 }
  0xa8   :  { %v358_v11 = vpack.c.bf16 %v342_v2, %v342_v2 }
  0xa9   :  { %v355_v6 = vpack.c.bf16 %v339_v1, %v339_v1 }
  0xaa   :  { %v390_v20 = vunpack.c.l.b16 %v358_v11 }
  0xab   :  { %v387_v8 = vunpack.c.l.b16 %v355_v6 }
  0xad   :  { %v230_v10 = vpop.f32.mrf.mxu3  ;;  %v402_v13 = vpack.c.b16 %v387_v8, %v386_v4 }
  0xae   :  { %v343_v12 = vmul.f32 %v2027_v52, %v230_v10  ;;  %v223_v15 = vpop.f32.mrf.mxu0 }
  0xaf   :  { %525 = vmatmul.bf16.vlgmr.msrb.gmra.mxu0 %v402_v13  ;;  %v340_v23 = vmul.f32 %v2049_v22, %v223_v15 }
  0xb0   :  { %v359_v17 = vpack.c.bf16 %v343_v12, %v343_v12 }
  0xb1   :  { %v356_v32 = vpack.c.bf16 %v340_v23, %v340_v23 }
  0xb2   :  { %v391_v21 = vunpack.c.l.b16 %v359_v17  ;;  %v2067_v17 = vpop.permute.xlu2 %325 }
  0xb3   :  { %v388_v36 = vunpack.c.l.b16 %v356_v32 }
  0xb4   :  { %v404_v24 = vpack.c.b16 %v391_v21, %v390_v20 }
  0xb5   :  { %v233_v7 = vpop.f32.mrf.mxu3 }
  0xb6   :  { %535 = vmatmul.bf16.vlgmr.msra.gmra.mxu1 %v404_v24  ;;  %v225_v29 = vpop.f32.mrf.mxu0  ;;  %v344_v34 = vmul.f32 %v2025_v51, %v233_v7 }
  0xb7   :  { %v341_v33 = vmul.f32 %v2052_v28, %v225_v29 }
  0xb8   :  { %v360_v40 = vpack.c.bf16 %v344_v34, %v344_v34  ;;  %v2073_v34 = vpop.permute.xlu0 %335 }
  0xb9   :  { %v357_v35 = vpack.c.bf16 %v341_v33, %v341_v33 }
  0xba   :  { %v392_v44 = vunpack.c.l.b16 %v360_v40 }
  0xbb   :  { %v389_v38 = vunpack.c.l.b16 %v357_v35 }
  0xbd   :  { %v235_v39 = vpop.f32.mrf.mxu3  ;;  %v403_v42 = vpack.c.b16 %v389_v38, %v388_v36 }
  0xbe   :  { %v345_v41 = vmul.f32 %v2031_v54, %v235_v39 }
  0xbf   :  { %530 = vmatmul.bf16.gmra.mxu0 %v403_v42 }
  0xc0   :  { %v361_v43 = vpack.c.bf16 %v345_v41, %v345_v41 }
  0xc2   :  { %v393_v45 = vunpack.c.l.b16 %v361_v43  ;;  %v585_v43 = vpop.f32.mrf.mxu2 }
  0xc4   :  { %v405_v46 = vpack.c.b16 %v393_v45, %v392_v44  ;;  %v1665_v44 = vld [vmem:[%s2474_s5 + $0x78] sm:$0xff]  ;;  %v1664_v45 = vld [vmem:[%s2474_s5 + $0x70] sm:$0xff] }
  0xc5   :  { %v238_v47 = vpop.f32.mrf.mxu3  ;;  %1005 = vmatpush.bf16.msrb.mxu1 %v1665_v44 }
  0xc6   :  { %540 = vmatmul.bf16.gmra.mxu1 %v405_v46  ;;  %v346_v50 = vmul.f32 %v2020_v49, %v238_v47  ;;  %v1663_v46 = vld [vmem:[%s2474_s5 + $0x68] sm:$0xff] }
  0xc8   :  { %v362_v5 = vpack.c.bf16 %v346_v50, %v346_v50  ;;  %v1662_v50 = vld [vmem:[%s2474_s5 + $0x60] sm:$0xff] }
  0xc9   :  { %1006 = vmatpush.bf16.msrb.mxu1 %v1664_v45 }
  0xca   :  { %v394_v61 = vunpack.c.l.b16 %v362_v5  ;;  %v2085_v47 = vpop.f32.mrf.mxu2  ;;  %v1661_v5 = vld [vmem:[%s2474_s5 + $0x58] sm:$0xff] }
  0xcd   :  { %v240_v56 = vpop.f32.mrf.mxu3  ;;  %1007 = vmatpush.bf16.msrb.mxu1 %v1663_v46 }
  0xce   :  { %v347_v58 = vmul.f32 %v2029_v53, %v240_v56 }
  0xcf   :  { %574 = vmatmul.bf16.vlgmr.msra.gmra.mxu0 %v1896_v16 }
  0xd0   :  { %v363_v60 = vpack.c.bf16 %v347_v58, %v347_v58  ;;  %v2096_v58 = vld [vmem:[%s2473_s4] ss:$0 sm:$0xff] }
  0xd1   :  { %1008 = vmatpush.bf16.msrb.mxu1 %v1662_v50 }
  0xd2   :  { %v395_v63 = vunpack.c.l.b16 %v363_v60 }
  0xd4   :  { %v406_v1 = vpack.c.b16 %v395_v63, %v394_v61  ;;  %v590_v61 = vpop.f32.mrf.mxu2  ;;  %v1660_v63 = vld [vmem:[%s2474_s5 + $0x50] sm:$0xff] }
  0xd5   :  { %v243_v2 = vpop.f32.mrf.mxu3  ;;  %1009 = vmatpush.bf16.msrb.mxu1 %v1661_v5 }
  0xd6   :  { %545 = vmatmul.bf16.gmra.mxu1 %v406_v1  ;;  %v348_v4 = vmul.f32 %v2034_v55, %v243_v2 }
  0xd8   :  { %v364_v8 = vpack.c.bf16 %v348_v4, %v348_v4 }
  0xd9   :  { %1010 = vmatpush.bf16.msrb.mxu1 %v1660_v63 }
  0xda   :  { %v396_v11 = vunpack.c.l.b16 %v364_v8 }
  0xdd   :  { %v245_v6 = vpop.f32.mrf.mxu3 }
  0xde   :  { %v349_v3 = vmul.f32 %v2039_v59, %v245_v6  ;;  %v1659_v6 = vld [vmem:[%s2474_s5 + $0x48] sm:$0xff] }
  0xdf   :  { %579 = vmatmul.bf16.gmra.mxu0 %v1886_v14  ;;  %v2070_v14 = vpop.permute.xlu2 %330  ;;  %1011 = vmatpush.bf16.msrb.mxu1 %v1659_v6 }
  0xe0   :  { %v365_v10 = vpack.c.bf16 %v349_v3, %v349_v3  ;;  %v1658_v3 = vld [vmem:[%s2474_s5 + $0x40] sm:$0xff] }
  0xe2   :  { %v397_v12 = vunpack.c.l.b16 %v365_v10 }
  0xe3   :  { %1012 = vmatpush.bf16.msrb.mxu1 %v1658_v3 }
  0xe4   :  { %v407_v13 = vpack.c.b16 %v397_v12, %v396_v11  ;;  %v2110_v11 = vpop.f32.mrf.mxu2 }
  0xe5   :  { %v248_v16 = vpop.f32.mrf.mxu3 }
  0xe6   :  { %550 = vmatmul.bf16.gmra.mxu1 %v407_v13  ;;  %v350_v15 = vmul.f32 %v2046_v9, %v248_v16 }
  0xe8   :  { %v366_v21 = vpack.c.bf16 %v350_v15, %v350_v15 }
  0xea   :  { %v398_v24 = vunpack.c.l.b16 %v366_v21 }
  0xed   :  { %v250_v20 = vpop.f32.mrf.mxu3 }
  0xee   :  { %v351_v0 = vmul.f32 %v2067_v17, %v250_v20  ;;  %v595_v20 = vpop.f32.mrf.mxu2 }
  0xf0   :  { %v367_v23 = vpack.c.bf16 %v351_v0, %v351_v0 }
  0xf2   :  { %v399_v7 = vunpack.c.l.b16 %v367_v23 }
  0xf4   :  { %v408_v29 = vpack.c.b16 %v399_v7, %v398_v24 }
  0xf5   :  { %v253_v32 = vpop.f32.mrf.mxu3 }
  0xf6   :  { %555 = vmatmul.bf16.gmra.mxu1 %v408_v29  ;;  %v352_v33 = vmul.f32 %v2070_v14, %v253_v32  ;;  %v597_v7 = vpop.f32.mrf.mxu2 }
  0xf8   :  { %v368_v36 = vpack.c.bf16 %v352_v33, %v352_v33 }
  0xfa   :  { %v400_v40 = vunpack.c.l.b16 %v368_v36 }
  0xfd   :  { %v255_v35 = vpop.f32.mrf.mxu3 }
  0xfe   :  { %v353_v38 = vmul.f32 %v2073_v34, %v255_v35  ;;  %v2118_v44 = vpop.f32.mrf.mxu2 }
 0x100   :  { %v369_v39 = vpack.c.bf16 %v353_v38, %v353_v38 }
 0x102   :  { %v401_v41 = vunpack.c.l.b16 %v369_v39 }
 0x104   :  { %v409_v42 = vpack.c.b16 %v401_v41, %v400_v40 }
 0x106   :  { %560 = vmatmul.bf16.gmra.mxu1 %v409_v42 }
 0x12c   :  { %v526_v56 = vpop.f32.mrf.mxu0 }
 0x12d   :  { %v527_v23 = vadd.f32 %v2096_v58, %v526_v56 }
 0x133   :  { %v536_v60 = vpop.f32.mrf.mxu1 }
 0x134   :  { %v537_v1 = vadd.f32 %v2096_v58, %v536_v60  ;;  %v528_v2 = vpop.f32.mrf.mxu0 }
 0x135   :  { %v529_v32 = vadd.f32 %v2096_v58, %v528_v2 }
 0x136   :  { %v2102_v4 = vadd.f32 %v585_v43, %v537_v1 }
 0x13b   :  { %v538_v8 = vpop.f32.mrf.mxu1 }
 0x13c   :  { %v531_v10 = vpop.f32.mrf.mxu0 }
 0x13d   :  { %v532_v60 = vadd.f32 %v2096_v58, %v531_v10 }
 0x143   :  { %v541_v12 = vpop.f32.mrf.mxu1 }
 0x144   :  { %v542_v13 = vadd.f32 %v2096_v58, %v541_v12  ;;  %v533_v16 = vpop.f32.mrf.mxu0 }
 0x146   :  { %v2113_v15 = vadd.f32 %v590_v61, %v542_v13  ;;  %v534_v13 = vadd.f32 %v2096_v58, %v533_v16 }
 0x14b   :  { %v543_v21 = vpop.f32.mrf.mxu1 }
 0x14c   :  { %v575_v0 = vpop.f32.mrf.mxu0 }
 0x14d   :  { %v576_v24 = vadd.f32 %v575_v0, %v527_v23 }
 0x14f   :  { %v615_v33 = vmax.f32 %v576_v24, 0.0 }
 0x151   :  { %v631_v40 = vpack.c.bf16 %v615_v33, %v615_v33 }
 0x153   :  { %v546_v29 = vpop.f32.mrf.mxu1  ;;  %v696_v45 = vunpack.c.l.b16 %v631_v40 }
 0x154   :  { %v547_v35 = vadd.f32 %v2096_v58, %v546_v29  ;;  %v577_v36 = vpop.f32.mrf.mxu0  ;;  %v602_v29 = vpop.f32.mrf.mxu2 }
 0x155   :  { %v578_v39 = vadd.f32 %v577_v36, %v529_v32 }
 0x156   :  { %v596_v38 = vadd.f32 %v595_v20, %v547_v35  ;;  %v539_v35 = vadd.f32 %v2096_v58, %v538_v8  ;;  %v544_v8 = vadd.f32 %v2096_v58, %v543_v21 }
 0x157   :  { %v616_v41 = vmax.f32 %v578_v39, 0.0 }
 0x158   :  { %v623_v46 = vmax.f32 %v596_v38, 0.0 }
 0x159   :  { %v632_v42 = vpack.c.bf16 %v616_v41, %v616_v41  ;;  %v588_v41 = vadd.f32 %v2085_v47, %v539_v35 }
 0x15a   :  { %v639_v1 = vpack.c.bf16 %v623_v46, %v623_v46  ;;  %v619_v46 = vmax.f32 %v2102_v4, 0.0 }
 0x15b   :  { %v548_v43 = vpop.f32.mrf.mxu1  ;;  %v697_v50 = vunpack.c.l.b16 %v632_v42 }
 0x15c   :  { %v549_v56 = vadd.f32 %v2096_v58, %v548_v43  ;;  %v580_v5 = vpop.f32.mrf.mxu0  ;;  %v704_v0 = vunpack.c.l.b16 %v639_v1  ;;  %v605_v16 = vpop.f32.mrf.mxu2  ;;  %v620_v43 = vmax.f32 %v588_v41, 0.0 }
 0x15d   :  { %v2122_v63 = vpack.c.b16 %v697_v50, %v696_v45  ;;  %v581_v6 = vadd.f32 %v580_v5, %v532_v60 }
 0x15e   :  { %v598_v61 = vadd.f32 %v597_v7, %v549_v56  ;;  %v636_v50 = vpack.c.bf16 %v620_v43, %v620_v43  ;;  %v635_v56 = vpack.c.bf16 %v619_v46, %v619_v46 }
 0x15f   :  { %1013 = vmatmul.bf16.vlgmr.msrb.gmra.mxu1 %v2122_v63  ;;  %v617_v20 = vmax.f32 %v581_v6, 0.0 }
 0x160   :  { %v624_v2 = vmax.f32 %v598_v61, 0.0  ;;  %v701_v60 = vunpack.c.l.b16 %v636_v50  ;;  %v700_v1 = vunpack.c.l.b16 %v635_v56 }
 0x161   :  { %v633_v10 = vpack.c.bf16 %v617_v20, %v617_v20 }
 0x162   :  { %v640_v3 = vpack.c.bf16 %v624_v2, %v624_v2  ;;  %v593_v2 = vadd.f32 %v2110_v11, %v544_v8  ;;  %v714_v47 = vpack.c.b16 %v701_v60, %v700_v1 }
 0x163   :  { %v551_v12 = vpop.f32.mrf.mxu1  ;;  %v698_v39 = vunpack.c.l.b16 %v633_v10 }
 0x164   :  { %v705_v23 = vunpack.c.l.b16 %v640_v3  ;;  %v582_v24 = vpop.f32.mrf.mxu0  ;;  %v607_v5 = vpop.f32.mrf.mxu2  ;;  %v622_v6 = vmax.f32 %v593_v2, 0.0  ;;  %v621_v3 = vmax.f32 %v2113_v15, 0.0 }
 0x165   :  { %v583_v32 = vadd.f32 %v582_v24, %v534_v13 }
 0x166   :  { %v2126_v33 = vpack.c.b16 %v705_v23, %v704_v0  ;;  %v638_v23 = vpack.c.bf16 %v622_v6, %v622_v6  ;;  %v637_v24 = vpack.c.bf16 %v621_v3, %v621_v3 }
 0x167   :  { %v618_v7 = vmax.f32 %v583_v32, 0.0 }
 0x168   :  { %v703_v11 = vunpack.c.l.b16 %v638_v23 }
 0x169   :  { %v634_v36 = vpack.c.bf16 %v618_v7, %v618_v7 }
 0x16b   :  { %v553_v38 = vpop.f32.mrf.mxu1  ;;  %v699_v40 = vunpack.c.l.b16 %v634_v36  ;;  %v702_v36 = vunpack.c.l.b16 %v637_v24 }
 0x16c   :  { %v610_v13 = vpop.f32.mrf.mxu2  ;;  %v554_v10 = vadd.f32 %v2096_v58, %v553_v38 }
 0x16d   :  { %v2130_v42 = vpack.c.b16 %v699_v40, %v698_v39  ;;  %v552_v39 = vadd.f32 %v2096_v58, %v551_v12  ;;  %v715_v8 = vpack.c.b16 %v703_v11, %v702_v36 }
 0x16e   :  { %v603_v46 = vadd.f32 %v602_v29, %v554_v10 }
 0x16f   :  { %1018 = vmatmul.bf16.gmra.mxu1 %v2130_v42 }
 0x173   :  { %v556_v45 = vpop.f32.mrf.mxu1 }
 0x174   :  { %v557_v21 = vadd.f32 %v2096_v58, %v556_v45  ;;  %v612_v43 = vpop.f32.mrf.mxu2  ;;  %v601_v45 = vadd.f32 %v2118_v44, %v552_v39 }
 0x176   :  { %v606_v15 = vadd.f32 %v605_v16, %v557_v21  ;;  %v625_v6 = vmax.f32 %v601_v45, 0.0 }
 0x178   :  { %v627_v60 = vmax.f32 %v606_v15, 0.0  ;;  %v641_v29 = vpack.c.bf16 %v625_v6, %v625_v6 }
 0x17a   :  { %v643_v12 = vpack.c.bf16 %v627_v60, %v627_v60  ;;  %v706_v44 = vunpack.c.l.b16 %v641_v29 }
 0x17b   :  { %v558_v61 = vpop.f32.mrf.mxu1 }
 0x17c   :  { %v559_v4 = vadd.f32 %v2096_v58, %v558_v61 }
 0x17e   :  { %v608_v7 = vadd.f32 %v607_v5, %v559_v4  ;;  %v626_v5 = vmax.f32 %v603_v46, 0.0 }
 0x17f   :  { %1023 = vmatmul.bf16.gmra.mxu1 %v714_v47 }
 0x180   :  { %v628_v50 = vmax.f32 %v608_v7, 0.0 }
 0x182   :  { %v644_v1 = vpack.c.bf16 %v628_v50, %v628_v50 }
 0x183   :  { %v561_v20 = vpop.f32.mrf.mxu1 }
 0x184   :  { %v562_v0 = vadd.f32 %v2096_v58, %v561_v20  ;;  %v709_v20 = vunpack.c.l.b16 %v644_v1 }
 0x186   :  { %v611_v32 = vadd.f32 %v610_v13, %v562_v0  ;;  %v642_v13 = vpack.c.bf16 %v626_v5, %v626_v5  ;;  %v708_v0 = vunpack.c.l.b16 %v643_v12 }
 0x188   :  { %v629_v40 = vmax.f32 %v611_v32, 0.0  ;;  %v718_v4 = vpack.c.b16 %v709_v20, %v708_v0  ;;  %v707_v23 = vunpack.c.l.b16 %v642_v13 }
 0x18a   :  { %v645_v61 = vpack.c.bf16 %v629_v40, %v629_v40  ;;  %v717_v24 = vpack.c.b16 %v707_v23, %v706_v44 }
 0x18b   :  { %v563_v35 = vpop.f32.mrf.mxu1 }
 0x18c   :  { %v564_v41 = vadd.f32 %v2096_v58, %v563_v35  ;;  %v710_v16 = vunpack.c.l.b16 %v645_v61 }
 0x18e   :  { %v613_v56 = vadd.f32 %v612_v43, %v564_v41 }
 0x18f   :  { %1028 = vmatmul.bf16.gmra.mxu1 %v715_v8 }
 0x190   :  { %v630_v38 = vmax.f32 %v613_v56, 0.0 }
 0x192   :  { %v646_v2 = vpack.c.bf16 %v630_v38, %v630_v38 }
 0x194   :  { %v711_v3 = vunpack.c.l.b16 %v646_v2 }
 0x196   :  { %v719_v58 = vpack.c.b16 %v711_v3, %v710_v16 }
 0x198   :  { %728 = vmatpush.bf16.msrb.mxu3 %v719_v58 }
 0x19c   :  { %729 = vmatpush.bf16.msrb.mxu3 %v718_v4 }
 0x19f   :  { %1033 = vmatmul.bf16.gmra.mxu1 %v2126_v33 }
 0x1a0   :  { %730 = vmatpush.bf16.msrb.mxu3 %v717_v24 }
 0x1a4   :  { %731 = vmatpush.bf16.msrb.mxu3 %v2126_v33  ;;  %v1657_v33 = vld [vmem:[%s2474_s5 + $0x38] sm:$0xff] }
 0x1a5   :  { %956 = vmatpush.bf16.msrb.mxu0 %v1657_v33 }
 0x1a8   :  { %732 = vmatpush.bf16.msrb.mxu3 %v715_v8 }
 0x1ac   :  { %733 = vmatpush.bf16.msrb.mxu3 %v714_v47 }
 0x1af   :  { %1038 = vmatmul.bf16.gmra.mxu1 %v717_v24 }
 0x1b0   :  { %734 = vmatpush.bf16.msrb.mxu3 %v2130_v42 }
 0x1b4   :  { %735 = vmatpush.bf16.msrb.mxu3 %v2122_v63 }
 0x1b7   :  { %736 = vmatmul.bf16.vlgmr.msrb.gmra.mxu3 %v1904_v18  ;;  %v1656_v18 = vld [vmem:[%s2474_s5 + $0x30] sm:$0xff] }
 0x1b8   :  { %957 = vmatpush.bf16.msrb.mxu0 %v1656_v18 }
 0x1bf   :  { %1043 = vmatmul.bf16.gmra.mxu1 %v718_v4 }
 0x1c7   :  { %741 = vmatmul.bf16.gmra.mxu3 %v1933_v25  ;;  %v1654_v25 = vld [vmem:[%s2474_s5 + $0x20] sm:$0xff] }
 0x1cf   :  { %1048 = vmatmul.bf16.gmra.mxu1 %v719_v58 }
 0x1d7   :  { %746 = vmatmul.bf16.gmra.mxu3 %v1909_v19  ;;  %v1655_v19 = vld [vmem:[%s2474_s5 + $0x28] sm:$0xff] }
 0x1d8   :  { %958 = vmatpush.bf16.msrb.mxu0 %v1655_v19 }
 0x1dc   :  { %959 = vmatpush.bf16.msrb.mxu0 %v1654_v25 }
 0x1e7   :  { %751 = vmatmul.bf16.gmra.mxu3 %v1938_v26  ;;  %v1653_v26 = vld [vmem:[%s2474_s5 + $0x18] sm:$0xff] }
 0x1e8   :  { %960 = vmatpush.bf16.msrb.mxu0 %v1653_v26 }
 0x1f7   :  { %756 = vmatmul.bf16.gmra.mxu3 %v1945_v27  ;;  %v1652_v27 = vld [vmem:[%s2474_s5 + $0x10] sm:$0xff] }
 0x1f8   :  { %961 = vmatpush.bf16.msrb.mxu0 %v1652_v27 }
 0x207   :  { %761 = vmatmul.bf16.gmra.mxu3 %v1957_v30  ;;  %v1651_v30 = vld [vmem:[%s2474_s5 + $0x8] sm:$0xff] }
 0x208   :  { %962 = vmatpush.bf16.msrb.mxu0 %v1651_v30  ;;  %v1672_v30 = vld [vmem:[%s2476_s7 + $0x30] sm:$0xff] }
 0x217   :  { %766 = vmatmul.bf16.gmra.mxu3 %v1963_v31  ;;  %v1650_v31 = vld [vmem:[%s2474_s5] sm:$0xff] }
 0x218   :  { %963 = vmatpush.bf16.msrb.mxu0 %v1650_v31 }
 0x227   :  { %771 = vmatmul.bf16.gmra.mxu3 %v1984_v37 }
 0x23a   :  { %v737_v63 = vpop.f32.mrf.mxu3 }
 0x23b   :  { %v777_v42 = vmul.f32 %v737_v63, %v2036_v57  ;;  %v1670_v63 = vld [vmem:[%s2476_s7 + $0x20] sm:$0xff] }
 0x23d   :  { %v793_v21 = vpack.c.bf16 %v777_v42, %v777_v42 }
 0x23f   :  { %v825_v7 = vunpack.c.l.b16 %v793_v21 }
 0x242   :  { %v739_v47 = vpop.f32.mrf.mxu3 }
 0x243   :  { %v778_v32 = vmul.f32 %v739_v47, %v2041_v62 }
 0x245   :  { %v794_v10 = vpack.c.bf16 %v778_v32, %v778_v32 }
 0x247   :  { %v826_v11 = vunpack.c.l.b16 %v794_v10 }
 0x249   :  { %v841_v35 = vpack.c.b16 %v826_v11, %v825_v7  ;;  %v1669_v7 = vld [vmem:[%s2476_s7 + $0x18] sm:$0xff] }
 0x24a   :  { %v742_v36 = vpop.f32.mrf.mxu3 }
 0x24b   :  { %964 = vmatmul.bf16.vlgmr.msrb.gmra.mxu0 %v841_v35  ;;  %v779_v39 = vmul.f32 %v742_v36, %v2049_v22  ;;  %v1668_v36 = vld [vmem:[%s2476_s7 + $0x10] sm:$0xff] }
 0x24d   :  { %v795_v40 = vpack.c.bf16 %v779_v39, %v779_v39  ;;  %v1667_v39 = vld [vmem:[%s2476_s7 + $0x8] sm:$0xff] }
 0x24f   :  { %v827_v43 = vunpack.c.l.b16 %v795_v40 }
 0x252   :  { %v744_v15 = vpop.f32.mrf.mxu3 }
 0x253   :  { %v780_v37 = vmul.f32 %v744_v15, %v2052_v28 }
 0x255   :  { %v796_v41 = vpack.c.bf16 %v780_v37, %v780_v37 }
 0x257   :  { %v828_v46 = vunpack.c.l.b16 %v796_v41  ;;  %v1666_v41 = vld [vmem:[%s2476_s7] sm:$0xff] }
 0x259   :  { %v842_v57 = vpack.c.b16 %v828_v46, %v827_v43 }
 0x25a   :  { %v747_v50 = vpop.f32.mrf.mxu3 }
 0x25b   :  { %969 = vmatmul.bf16.gmra.mxu0 %v842_v57  ;;  %v781_v62 = vmul.f32 %v747_v50, %v2017_v48 }
 0x25d   :  { %v797_v8 = vpack.c.bf16 %v781_v62, %v781_v62 }
 0x25f   :  { %v829_v61 = vunpack.c.l.b16 %v797_v8  ;;  %v2223_v8 = vld [vmem:[%s2475_s6] ss:$0 sm:$0xff] }
 0x262   :  { %v749_v56 = vpop.f32.mrf.mxu3 }
 0x263   :  { %v782_v45 = vmul.f32 %v749_v56, %v2027_v52 }
 0x265   :  { %v798_v60 = vpack.c.bf16 %v782_v45, %v782_v45 }
 0x267   :  { %v830_v38 = vunpack.c.l.b16 %v798_v60 }
 0x269   :  { %v843_v22 = vpack.c.b16 %v830_v38, %v829_v61 }
 0x26a   :  { %v752_v5 = vpop.f32.mrf.mxu3 }
 0x26b   :  { %974 = vmatmul.bf16.gmra.mxu0 %v843_v22  ;;  %v783_v28 = vmul.f32 %v752_v5, %v2025_v51 }
 0x26d   :  { %v799_v2 = vpack.c.bf16 %v783_v28, %v783_v28 }
 0x26f   :  { %v831_v16 = vunpack.c.l.b16 %v799_v2 }
 0x272   :  { %v754_v1 = vpop.f32.mrf.mxu3 }
 0x273   :  { %v784_v6 = vmul.f32 %v754_v1, %v2031_v54 }
 0x275   :  { %v800_v12 = vpack.c.bf16 %v784_v6, %v784_v6 }
 0x277   :  { %v832_v3 = vunpack.c.l.b16 %v800_v12 }
 0x279   :  { %v844_v48 = vpack.c.b16 %v832_v3, %v831_v16 }
 0x27a   :  { %v757_v13 = vpop.f32.mrf.mxu3 }
 0x27b   :  { %979 = vmatmul.bf16.gmra.mxu0 %v844_v48  ;;  %v785_v52 = vmul.f32 %v757_v13, %v2020_v49  ;;  %v1673_v49 = vld [vmem:[%s2476_s7 + $0x38] sm:$0xff] }
 0x27c   :  { %1146 = vmatpush.bf16.msrb.mxu2 %v1673_v49 }
 0x27d   :  { %v801_v20 = vpack.c.bf16 %v785_v52, %v785_v52 }
 0x27f   :  { %v833_v4 = vunpack.c.l.b16 %v801_v20 }
 0x280   :  { %1147 = vmatpush.bf16.msrb.mxu2 %v1672_v30 }
 0x282   :  { %v759_v58 = vpop.f32.mrf.mxu3 }
 0x283   :  { %v786_v29 = vmul.f32 %v759_v58, %v2029_v53 }
 0x285   :  { %v802_v0 = vpack.c.bf16 %v786_v29, %v786_v29 }
 0x287   :  { %v834_v23 = vunpack.c.l.b16 %v802_v0 }
 0x289   :  { %v845_v51 = vpack.c.b16 %v834_v23, %v833_v4 }
 0x28a   :  { %v762_v44 = vpop.f32.mrf.mxu3 }
 0x28b   :  { %984 = vmatmul.bf16.gmra.mxu0 %v845_v51  ;;  %v787_v54 = vmul.f32 %v762_v44, %v2034_v55  ;;  %v1671_v55 = vld [vmem:[%s2476_s7 + $0x28] sm:$0xff] }
 0x28c   :  { %1148 = vmatpush.bf16.msrb.mxu2 %v1671_v55 }
 0x28d   :  { %v803_v33 = vpack.c.bf16 %v787_v54, %v787_v54 }
 0x28f   :  { %v835_v25 = vunpack.c.l.b16 %v803_v33 }
 0x290   :  { %1149 = vmatpush.bf16.msrb.mxu2 %v1670_v63 }
 0x292   :  { %v764_v24 = vpop.f32.mrf.mxu3 }
 0x293   :  { %v788_v18 = vmul.f32 %v764_v24, %v2039_v59 }
 0x294   :  { %1150 = vmatpush.bf16.msrb.mxu2 %v1669_v7 }
 0x295   :  { %v804_v19 = vpack.c.bf16 %v788_v18, %v788_v18 }
 0x297   :  { %v836_v26 = vunpack.c.l.b16 %v804_v19 }
 0x298   :  { %1151 = vmatpush.bf16.msrb.mxu2 %v1668_v36 }
 0x299   :  { %v846_v53 = vpack.c.b16 %v836_v26, %v835_v25 }
 0x29a   :  { %v767_v27 = vpop.f32.mrf.mxu3 }
 0x29b   :  { %989 = vmatmul.bf16.gmra.mxu0 %v846_v53  ;;  %v789_v59 = vmul.f32 %v767_v27, %v2046_v9  ;;  %v1014_v9 = vpop.f32.mrf.mxu1 }
 0x29c   :  { %1152 = vmatpush.bf16.msrb.mxu2 %v1667_v39 }
 0x29d   :  { %v805_v42 = vpack.c.bf16 %v789_v59, %v789_v59 }
 0x29f   :  { %v837_v32 = vunpack.c.l.b16 %v805_v42 }
 0x2a0   :  { %1153 = vmatpush.bf16.msrb.mxu2 %v1666_v41 }
 0x2a2   :  { %v769_v31 = vpop.f32.mrf.mxu3 }
 0x2a3   :  { %v790_v47 = vmul.f32 %v769_v31, %v2067_v17  ;;  %v1016_v46 = vpop.f32.mrf.mxu1 }
 0x2a5   :  { %v806_v21 = vpack.c.bf16 %v790_v47, %v790_v47 }
 0x2a7   :  { %v838_v10 = vunpack.c.l.b16 %v806_v21 }
 0x2a9   :  { %v847_v11 = vpack.c.b16 %v838_v10, %v837_v32 }
 0x2aa   :  { %v772_v35 = vpop.f32.mrf.mxu3 }
 0x2ab   :  { %994 = vmatmul.bf16.gmra.mxu0 %v847_v11  ;;  %v791_v17 = vmul.f32 %v772_v35, %v2070_v14  ;;  %v1019_v14 = vpop.f32.mrf.mxu1 }
 0x2ad   :  { %v807_v40 = vpack.c.bf16 %v791_v17, %v791_v17 }
 0x2af   :  { %v839_v57 = vunpack.c.l.b16 %v807_v40 }
 0x2b2   :  { %v774_v15 = vpop.f32.mrf.mxu3 }
 0x2b3   :  { %v792_v37 = vmul.f32 %v774_v15, %v2073_v34  ;;  %v1021_v45 = vpop.f32.mrf.mxu1 }
 0x2b5   :  { %v808_v43 = vpack.c.bf16 %v792_v37, %v792_v37 }
 0x2b7   :  { %v840_v50 = vunpack.c.l.b16 %v808_v43 }
 0x2b9   :  { %v848_v62 = vpack.c.b16 %v840_v50, %v839_v57 }
 0x2bb   :  { %999 = vmatmul.bf16.gmra.mxu0 %v848_v62  ;;  %v1024_v5 = vpop.f32.mrf.mxu1 }
 0x2c3   :  { %v1026_v16 = vpop.f32.mrf.mxu1 }
 0x2c8   :  { %v965_v56 = vpop.f32.mrf.mxu0 }
 0x2c9   :  { %v966_v34 = vadd.f32 %v2223_v8, %v965_v56 }
 0x2cb   :  { %v1015_v61 = vadd.f32 %v1014_v9, %v966_v34  ;;  %v1029_v0 = vpop.f32.mrf.mxu1 }
 0x2cd   :  { %v1054_v28 = vmax.f32 %v1015_v61, 0.0 }
 0x2d0   :  { %v967_v60 = vpop.f32.mrf.mxu0 }
 0x2d1   :  { %v968_v38 = vadd.f32 %v2223_v8, %v967_v60 }
 0x2d3   :  { %v1017_v22 = vadd.f32 %v1016_v46, %v968_v38  ;;  %v1031_v24 = vpop.f32.mrf.mxu1 }
 0x2d5   :  { %v1055_v1 = vmax.f32 %v1017_v22, 0.0 }
 0x2d7   :  { %v1070_v2 = vpack.c.bf16 %v1055_v1, %v1054_v28 }
 0x2d8   :  { %v970_v6 = vpop.f32.mrf.mxu0 }
 0x2d9   :  { %1154 = vmatmul.bf16.vlgmr.msrb.gmra.mxu2 %v1070_v2  ;;  %v971_v12 = vadd.f32 %v2223_v8, %v970_v6 }
 0x2db   :  { %v1020_v48 = vadd.f32 %v1019_v14, %v971_v12  ;;  %v1034_v49 = vpop.f32.mrf.mxu1 }
 0x2dd   :  { %v1056_v58 = vmax.f32 %v1020_v48, 0.0 }
 0x2e0   :  { %v972_v3 = vpop.f32.mrf.mxu0 }
 0x2e1   :  { %v973_v13 = vadd.f32 %v2223_v8, %v972_v3 }
 0x2e3   :  { %v1022_v52 = vadd.f32 %v1021_v45, %v973_v13  ;;  %v1036_v42 = vpop.f32.mrf.mxu1 }
 0x2e5   :  { %v1057_v20 = vmax.f32 %v1022_v52, 0.0 }
 0x2e7   :  { %v1071_v29 = vpack.c.bf16 %v1057_v20, %v1056_v58 }
 0x2e8   :  { %v975_v4 = vpop.f32.mrf.mxu0 }
 0x2e9   :  { %1159 = vmatmul.bf16.gmra.mxu2 %v1071_v29  ;;  %v976_v23 = vadd.f32 %v2223_v8, %v975_v4  ;;  %v1195_v4 = vlaneseq }
 0x2eb   :  { %v1025_v44 = vadd.f32 %v1024_v5, %v976_v23  ;;  %v1039_v10 = vpop.f32.mrf.mxu1  ;;  %v2241_v23 = vand.u32 127, %v1195_v4 }
 0x2ed   :  { %v1058_v18 = vmax.f32 %v1025_v44, 0.0  ;;  %vm1197_vm0 = vcmp.lt.s32.totalorder %v2241_v23, 8 }
 0x2f0   :  { %v977_v51 = vpop.f32.mrf.mxu0 }
 0x2f1   :  { %v978_v54 = vadd.f32 %v2223_v8, %v977_v51  ;;  %v2246_v51 = vld [vmem:[%s2477_s8] ss:$0 sm:$0xff] }
 0x2f3   :  { %v1027_v33 = vadd.f32 %v1026_v16, %v978_v54  ;;  %v1041_v40 = vpop.f32.mrf.mxu1 }
 0x2f5   :  { %v1059_v19 = vmax.f32 %v1027_v33, 0.0 }
 0x2f7   :  { %v1072_v25 = vpack.c.bf16 %v1059_v19, %v1058_v18 }
 0x2f8   :  { %v980_v26 = vpop.f32.mrf.mxu0 }
 0x2f9   :  { %1164 = vmatmul.bf16.gmra.mxu2 %v1072_v25  ;;  %v981_v53 = vadd.f32 %v2223_v8, %v980_v26 }
 0x2fb   :  { %v1030_v30 = vadd.f32 %v1029_v0, %v981_v53  ;;  %v1044_v50 = vpop.f32.mrf.mxu1 }
 0x2fd   :  { %v1060_v31 = vmax.f32 %v1030_v30, 0.0 }
 0x300   :  { %v982_v27 = vpop.f32.mrf.mxu0 }
 0x301   :  { %v983_v55 = vadd.f32 %v2223_v8, %v982_v27 }
 0x303   :  { %v1032_v59 = vadd.f32 %v1031_v24, %v983_v55  ;;  %v1046_v60 = vpop.f32.mrf.mxu1 }
 0x305   :  { %v1061_v63 = vmax.f32 %v1032_v59, 0.0 }
 0x307   :  { %v1073_v47 = vpack.c.bf16 %v1061_v63, %v1060_v31 }
 0x308   :  { %v985_v21 = vpop.f32.mrf.mxu0 }
 0x309   :  { %1169 = vmatmul.bf16.gmra.mxu2 %v1073_v47  ;;  %v986_v32 = vadd.f32 %v2223_v8, %v985_v21 }
 0x30b   :  { %v1035_v11 = vadd.f32 %v1034_v49, %v986_v32  ;;  %v1049_v6 = vpop.f32.mrf.mxu1 }
 0x30d   :  { %v1062_v36 = vmax.f32 %v1035_v11, 0.0 }
 0x310   :  { %v987_v7 = vpop.f32.mrf.mxu0 }
 0x311   :  { %v988_v35 = vadd.f32 %v2223_v8, %v987_v7 }
 0x313   :  { %v1037_v9 = vadd.f32 %v1036_v42, %v988_v35  ;;  %v1051_v52 = vpop.f32.mrf.mxu1 }
 0x315   :  { %v1063_v17 = vmax.f32 %v1037_v9, 0.0 }
 0x317   :  { %v1074_v39 = vpack.c.bf16 %v1063_v17, %v1062_v36 }
 0x318   :  { %v990_v15 = vpop.f32.mrf.mxu0 }
 0x319   :  { %1174 = vmatmul.bf16.gmra.mxu2 %v1074_v39  ;;  %v991_v37 = vadd.f32 %v2223_v8, %v990_v15 }
 0x31b   :  { %v1040_v43 = vadd.f32 %v1039_v10, %v991_v37 }
 0x31d   :  { %v1064_v62 = vmax.f32 %v1040_v43, 0.0 }
 0x320   :  { %v992_v41 = vpop.f32.mrf.mxu0 }
 0x321   :  { %v993_v46 = vadd.f32 %v2223_v8, %v992_v41 }
 0x323   :  { %v1042_v57 = vadd.f32 %v1041_v40, %v993_v46 }
 0x325   :  { %v1065_v14 = vmax.f32 %v1042_v57, 0.0 }
 0x327   :  { %v1075_v56 = vpack.c.bf16 %v1065_v14, %v1064_v62 }
 0x328   :  { %v995_v45 = vpop.f32.mrf.mxu0 }
 0x329   :  { %1179 = vmatmul.bf16.gmra.mxu2 %v1075_v56  ;;  %v996_v34 = vadd.f32 %v2223_v8, %v995_v45 }
 0x32b   :  { %v1045_v38 = vadd.f32 %v1044_v50, %v996_v34 }
 0x32d   :  { %v1066_v28 = vmax.f32 %v1045_v38, 0.0 }
 0x330   :  { %v997_v61 = vpop.f32.mrf.mxu0 }
 0x331   :  { %v998_v22 = vadd.f32 %v2223_v8, %v997_v61 }
 0x333   :  { %v1047_v5 = vadd.f32 %v1046_v60, %v998_v22 }
 0x335   :  { %v1067_v1 = vmax.f32 %v1047_v5, 0.0 }
 0x337   :  { %v1076_v2 = vpack.c.bf16 %v1067_v1, %v1066_v28 }
 0x338   :  { %v1000_v12 = vpop.f32.mrf.mxu0 }
 0x339   :  { %1184 = vmatmul.bf16.gmra.mxu2 %v1076_v2  ;;  %v1001_v16 = vadd.f32 %v2223_v8, %v1000_v12 }
 0x33b   :  { %v1050_v48 = vadd.f32 %v1049_v6, %v1001_v16 }
 0x33d   :  { %v1068_v20 = vmax.f32 %v1050_v48, 0.0 }
 0x340   :  { %v1002_v3 = vpop.f32.mrf.mxu0 }
 0x341   :  { %v1003_v13 = vadd.f32 %v2223_v8, %v1002_v3 }
 0x343   :  { %v1052_v58 = vadd.f32 %v1051_v52, %v1003_v13 }
 0x345   :  { %v1069_v29 = vmax.f32 %v1052_v58, 0.0 }
 0x347   :  { %v1077_v0 = vpack.c.bf16 %v1069_v29, %v1068_v20 }
 0x349   :  { %1189 = vmatmul.bf16.gmra.mxu2 %v1077_v0 }
 0x35c   :  { %v1155_v44 = vpop.f32.mrf.mxu2 }
 0x35d   :  { %v1156_v54 = vadd.f32 %v2246_v51, %v1155_v44 }
 0x35f   :  { %v1198_v8 = vsel %vm1197_vm0, %v1156_v54, -1e+30 }
 0x360   :  { %1214 = vmax.xlane.f32.xlu1 %v1198_v8 }
 0x364   :  { %v1157_v24 = vpop.f32.mrf.mxu2 }
 0x365   :  { %v1158_v33 = vadd.f32 %v2246_v51, %v1157_v24 }
 0x367   :  { %v2255_v18 = vsel %vm1197_vm0, %v1158_v33, -1e+30 }
 0x368   :  { %1216 = vmax.xlane.f32.xlu2 %v2255_v18 }
 0x36c   :  { %v1160_v19 = vpop.f32.mrf.mxu2 }
 0x36d   :  { %v1161_v25 = vadd.f32 %v2246_v51, %v1160_v19 }
 0x36f   :  { %v2261_v26 = vsel %vm1197_vm0, %v1161_v25, -1e+30 }
 0x370   :  { %1218 = vmax.xlane.f32.xlu0 %v2261_v26 }
 0x374   :  { %v1162_v49 = vpop.f32.mrf.mxu2 }
 0x375   :  { %v1163_v53 = vadd.f32 %v2246_v51, %v1162_v49 }
 0x377   :  { %v2267_v27 = vsel %vm1197_vm0, %v1163_v53, -1e+30 }
 0x378   :  { %1220 = vmax.xlane.f32.xlu2 %v2267_v27 }
 0x37c   :  { %v1165_v30 = vpop.f32.mrf.mxu2 }
 0x37d   :  { %v1166_v55 = vadd.f32 %v2246_v51, %v1165_v30 }
 0x37f   :  { %v2273_v59 = vsel %vm1197_vm0, %v1166_v55, -1e+30 }
 0x380   :  { %1222 = vmax.xlane.f32.xlu1 %v2273_v59 }
 0x384   :  { %v1167_v31 = vpop.f32.mrf.mxu2 }
 0x385   :  { %v1168_v63 = vadd.f32 %v2246_v51, %v1167_v31 }
 0x387   :  { %v2279_v42 = vsel %vm1197_vm0, %v1168_v63, -1e+30 }
 0x388   :  { %1224 = vmax.xlane.f32.xlu2 %v2279_v42 }
 0x38c   :  { %v1170_v47 = vpop.f32.mrf.mxu2 }
 0x38d   :  { %v1171_v21 = vadd.f32 %v2246_v51, %v1170_v47 }
 0x38f   :  { %v2285_v32 = vsel %vm1197_vm0, %v1171_v21, -1e+30 }
 0x390   :  { %1226 = vmax.xlane.f32.xlu0 %v2285_v32 }
 0x394   :  { %v1172_v10 = vpop.f32.mrf.mxu2 }
 0x395   :  { %v1173_v7 = vadd.f32 %v2246_v51, %v1172_v10 }
 0x397   :  { %v2291_v11 = vsel %vm1197_vm0, %v1173_v7, -1e+30 }
 0x398   :  { %1228 = vmax.xlane.f32.xlu1 %v2291_v11 }
 0x39c   :  { %v1175_v35 = vpop.f32.mrf.mxu2 }
 0x39d   :  { %v1176_v9 = vadd.f32 %v2246_v51, %v1175_v35 }
 0x39f   :  { %v2297_v36 = vsel %vm1197_vm0, %v1176_v9, -1e+30 }
 0x3a0   :  { %1230 = vmax.xlane.f32.xlu2 %v2297_v36 }
 0x3a4   :  { %v1177_v17 = vpop.f32.mrf.mxu2 }
 0x3a5   :  { %v1178_v39 = vadd.f32 %v2246_v51, %v1177_v17 }
 0x3a7   :  { %v2303_v15 = vsel %vm1197_vm0, %v1178_v39, -1e+30 }
 0x3a8   :  { %1232 = vmax.xlane.f32.xlu0 %v2303_v15 }
 0x3ac   :  { %v1180_v40 = vpop.f32.mrf.mxu2 }
 0x3ad   :  { %v1181_v37 = vadd.f32 %v2246_v51, %v1180_v40 }
 0x3af   :  { %v2309_v41 = vsel %vm1197_vm0, %v1181_v37, -1e+30 }
 0x3b0   :  { %1234 = vmax.xlane.f32.xlu1 %v2309_v41 }
 0x3b4   :  { %v1182_v43 = vpop.f32.mrf.mxu2 }
 0x3b5   :  { %v1183_v46 = vadd.f32 %v2246_v51, %v1182_v43 }
 0x3b7   :  { %v2315_v57 = vsel %vm1197_vm0, %v1183_v46, -1e+30 }
 0x3b8   :  { %1236 = vmax.xlane.f32.xlu2 %v2315_v57 }
 0x3bc   :  { %v1185_v50 = vpop.f32.mrf.mxu2 }
 0x3bd   :  { %v1186_v62 = vadd.f32 %v2246_v51, %v1185_v50 }
 0x3bf   :  { %v2321_v14 = vsel %vm1197_vm0, %v1186_v62, -1e+30 }
 0x3c0   :  { %1238 = vmax.xlane.f32.xlu0 %v2321_v14 }
 0x3c4   :  { %v1187_v56 = vpop.f32.mrf.mxu2 }
 0x3c5   :  { %v1188_v45 = vadd.f32 %v2246_v51, %v1187_v56 }
 0x3c7   :  { %v2327_v34 = vsel %vm1197_vm0, %v1188_v45, -1e+30 }
 0x3c8   :  { %1240 = vmax.xlane.f32.xlu1 %v2327_v34 }
 0x3cc   :  { %v1190_v60 = vpop.f32.mrf.mxu2 }
 0x3cd   :  { %v1191_v61 = vadd.f32 %v2246_v51, %v1190_v60 }
 0x3cf   :  { %v2333_v38 = vsel %vm1197_vm0, %v1191_v61, -1e+30 }
 0x3d0   :  { %1242 = vmax.xlane.f32.xlu2 %v2333_v38 }
 0x3d3   :  { %v1215_v22 = vpop.xlane.xlu1 %1214 }
 0x3d4   :  { %v2336_v5 = vsub.f32 %v1198_v8, %v1215_v22  ;;  %v1192_v28 = vpop.f32.mrf.mxu2 }
 0x3d5   :  { %v1193_v1 = vadd.f32 %v2246_v51, %v1192_v28 }
 0x3d6   :  { %v1262_v2 = vmul.f32 1.442695, %v2336_v5 }
 0x3d7   :  { %v2342_v6 = vsel %vm1197_vm0, %v1193_v1, -1e+30 }
 0x3d8   :  { %1705 = vpow2.f32 %v1262_v2  ;;  %1244 = vmax.xlane.f32.xlu0 %v2342_v6 }
 0x3db   :  { %v1217_v12 = vpop.xlane.xlu2 %1216 }
 0x3dc   :  { %v2346_v16 = vsub.f32 %v2255_v18, %v1217_v12 }
 0x3de   :  { %v1706_v3 = vpop.eup %1705  ;;  %v1264_v48 = vmul.f32 1.442695, %v2346_v16 }
 0x3df   :  { %1294 = vadd.xlane.f32.xlu1 %v1706_v3 }
 0x3e0   :  { %1707 = vpow2.f32 %v1264_v48 }
 0x3e3   :  { %v1219_v13 = vpop.xlane.xlu0 %1218 }
 0x3e4   :  { %v2350_v52 = vsub.f32 %v2261_v26, %v1219_v13 }
 0x3e6   :  { %v1708_v58 = vpop.eup %1707  ;;  %v1266_v20 = vmul.f32 1.442695, %v2350_v52 }
 0x3e7   :  { %1296 = vadd.xlane.f32.xlu2 %v1708_v58 }
 0x3e8   :  { %1709 = vpow2.f32 %v1266_v20 }
 0x3eb   :  { %v1221_v29 = vpop.xlane.xlu2 %1220 }
 0x3ec   :  { %v2354_v0 = vsub.f32 %v2267_v27, %v1221_v29 }
 0x3ee   :  { %v1710_v4 = vpop.eup %1709  ;;  %v1268_v23 = vmul.f32 1.442695, %v2354_v0 }
 0x3ef   :  { %1298 = vadd.xlane.f32.xlu0 %v1710_v4 }
 0x3f0   :  { %1711 = vpow2.f32 %v1268_v23 }
 0x3f3   :  { %v1223_v51 = vpop.xlane.xlu1 %1222 }
 0x3f4   :  { %v2358_v44 = vsub.f32 %v2273_v59, %v1223_v51 }
 0x3f6   :  { %v1712_v54 = vpop.eup %1711  ;;  %v1270_v8 = vmul.f32 1.442695, %v2358_v44 }
 0x3f7   :  { %1300 = vadd.xlane.f32.xlu1 %v1712_v54 }
 0x3f8   :  { %1713 = vpow2.f32 %v1270_v8 }
 0x3fb   :  { %v1225_v24 = vpop.xlane.xlu2 %1224 }
 0x3fc   :  { %v2362_v33 = vsub.f32 %v2279_v42, %v1225_v24 }
 0x3fe   :  { %v1714_v18 = vpop.eup %1713  ;;  %v1272_v19 = vmul.f32 1.442695, %v2362_v33 }
 0x3ff   :  { %1302 = vadd.xlane.f32.xlu2 %v1714_v18 }
 0x400   :  { %1715 = vpow2.f32 %v1272_v19 }
 0x403   :  { %v1227_v25 = vpop.xlane.xlu0 %1226 }
 0x404   :  { %v2366_v26 = vsub.f32 %v2285_v32, %v1227_v25 }
 0x406   :  { %v1716_v49 = vpop.eup %1715  ;;  %v1274_v53 = vmul.f32 1.442695, %v2366_v26 }
 0x407   :  { %1304 = vadd.xlane.f32.xlu0 %v1716_v49 }
 0x408   :  { %1717 = vpow2.f32 %v1274_v53 }
 0x40b   :  { %v1229_v27 = vpop.xlane.xlu1 %1228 }
 0x40c   :  { %v2370_v30 = vsub.f32 %v2291_v11, %v1229_v27 }
 0x40e   :  { %v1718_v55 = vpop.eup %1717  ;;  %v1276_v59 = vmul.f32 1.442695, %v2370_v30 }
 0x40f   :  { %1306 = vadd.xlane.f32.xlu1 %v1718_v55 }
 0x410   :  { %1719 = vpow2.f32 %v1276_v59 }
 0x413   :  { %v1231_v31 = vpop.xlane.xlu2 %1230 }
 0x414   :  { %v2374_v63 = vsub.f32 %v2297_v36, %v1231_v31 }
 0x416   :  { %v1720_v42 = vpop.eup %1719  ;;  %v1278_v47 = vmul.f32 1.442695, %v2374_v63 }
 0x417   :  { %1308 = vadd.xlane.f32.xlu2 %v1720_v42 }
 0x418   :  { %1721 = vpow2.f32 %v1278_v47 }
 0x41b   :  { %v1233_v21 = vpop.xlane.xlu0 %1232 }
 0x41c   :  { %v2378_v32 = vsub.f32 %v2303_v15, %v1233_v21 }
 0x41e   :  { %v1722_v10 = vpop.eup %1721  ;;  %v1280_v7 = vmul.f32 1.442695, %v2378_v32 }
 0x41f   :  { %1310 = vadd.xlane.f32.xlu0 %v1722_v10 }
 0x420   :  { %1723 = vpow2.f32 %v1280_v7 }
 0x423   :  { %v1235_v11 = vpop.xlane.xlu1 %1234 }
 0x424   :  { %v2382_v35 = vsub.f32 %v2309_v41, %v1235_v11 }
 0x426   :  { %v1724_v9 = vpop.eup %1723  ;;  %v1282_v36 = vmul.f32 1.442695, %v2382_v35 }
 0x427   :  { %1312 = vadd.xlane.f32.xlu1 %v1724_v9 }
 0x428   :  { %1725 = vpow2.f32 %v1282_v36 }
 0x42b   :  { %v1237_v17 = vpop.xlane.xlu2 %1236 }
 0x42c   :  { %v2386_v39 = vsub.f32 %v2315_v57, %v1237_v17 }
 0x42e   :  { %v1726_v15 = vpop.eup %1725  ;;  %v1284_v40 = vmul.f32 1.442695, %v2386_v39 }
 0x42f   :  { %1314 = vadd.xlane.f32.xlu2 %v1726_v15 }
 0x430   :  { %1727 = vpow2.f32 %v1284_v40 }
 0x433   :  { %v1239_v37 = vpop.xlane.xlu0 %1238 }
 0x434   :  { %v2390_v43 = vsub.f32 %v2321_v14, %v1239_v37 }
 0x436   :  { %v1728_v41 = vpop.eup %1727  ;;  %v1286_v46 = vmul.f32 1.442695, %v2390_v43 }
 0x437   :  { %1316 = vadd.xlane.f32.xlu0 %v1728_v41 }
 0x438   :  { %1729 = vpow2.f32 %v1286_v46 }
 0x43b   :  { %v1241_v50 = vpop.xlane.xlu1 %1240 }
 0x43c   :  { %v2394_v62 = vsub.f32 %v2327_v34, %v1241_v50 }
 0x43e   :  { %v1730_v57 = vpop.eup %1729  ;;  %v1288_v56 = vmul.f32 1.442695, %v2394_v62 }
 0x43f   :  { %1318 = vadd.xlane.f32.xlu1 %v1730_v57 }
 0x440   :  { %1731 = vpow2.f32 %v1288_v56 }
 0x443   :  { %v1243_v45 = vpop.xlane.xlu2 %1242 }
 0x444   :  { %v2398_v60 = vsub.f32 %v2333_v38, %v1243_v45 }
 0x446   :  { %v1732_v14 = vpop.eup %1731  ;;  %v1290_v61 = vmul.f32 1.442695, %v2398_v60 }
 0x447   :  { %1320 = vadd.xlane.f32.xlu2 %v1732_v14 }
 0x448   :  { %1733 = vpow2.f32 %v1290_v61 }
 0x44b   :  { %v1245_v22 = vpop.xlane.xlu0 %1244 }
 0x44c   :  { %v2402_v28 = vsub.f32 %v2342_v6, %v1245_v22 }
 0x44e   :  { %v1734_v34 = vpop.eup %1733  ;;  %v1292_v1 = vmul.f32 1.442695, %v2402_v28 }
 0x44f   :  { %1322 = vadd.xlane.f32.xlu0 %v1734_v34 }
 0x450   :  { %1735 = vpow2.f32 %v1292_v1 }
 0x452   :  { %v1295_v2 = vpop.xlane.xlu1 %1294 }
 0x453   :  { %1737 = vlog2.f32 %v1295_v2 }
 0x456   :  { %v1736_v12 = vpop.eup %1735 }
 0x457   :  { %1324 = vadd.xlane.f32.xlu1 %v1736_v12 }
 0x459   :  { %v1738_v38 = vpop.eup %1737 }
 0x45a   :  { %v1327_v3 = vmul.f32 0.6931472, %v1738_v38  ;;  %v1297_v48 = vpop.xlane.xlu2 %1296 }
 0x45b   :  { %1739 = vlog2.f32 %v1297_v48 }
 0x45c   :  { %v1358_v13 = vsub.f32 %v2336_v5, %v1327_v3 }
 0x45e   :  { %1374 = vst [vmem:[%s2478_s9] sm:$0xff] %v1358_v13 }
 0x461   :  { %v1740_v6 = vpop.eup %1739 }
 0x462   :  { %v1329_v58 = vmul.f32 0.6931472, %v1740_v6  ;;  %v1299_v20 = vpop.xlane.xlu0 %1298 }
 0x463   :  { %1741 = vlog2.f32 %v1299_v20 }
 0x464   :  { %v1359_v29 = vsub.f32 %v2346_v16, %v1329_v58 }
 0x466   :  { %1375 = vst [vmem:[%s2478_s9 + $0x8] sm:$0xff] %v1359_v29 }
 0x469   :  { %v1742_v4 = vpop.eup %1741 }
 0x46a   :  { %v1331_v23 = vmul.f32 0.6931472, %v1742_v4  ;;  %v1301_v51 = vpop.xlane.xlu1 %1300 }
 0x46b   :  { %1743 = vlog2.f32 %v1301_v51 }
 0x46c   :  { %v1360_v5 = vsub.f32 %v2350_v52, %v1331_v23 }
 0x46e   :  { %1376 = vst [vmem:[%s2478_s9 + $0x10] sm:$0xff] %v1360_v5 }
 0x471   :  { %v1744_v54 = vpop.eup %1743 }
 0x472   :  { %v1333_v8 = vmul.f32 0.6931472, %v1744_v54  ;;  %v1303_v24 = vpop.xlane.xlu2 %1302 }
 0x473   :  { %1745 = vlog2.f32 %v1303_v24 }
 0x474   :  { %v1361_v16 = vsub.f32 %v2354_v0, %v1333_v8 }
 0x476   :  { %1377 = vst [vmem:[%s2478_s9 + $0x18] sm:$0xff] %v1361_v16 }
 0x479   :  { %v1746_v18 = vpop.eup %1745 }
 0x47a   :  { %v1335_v19 = vmul.f32 0.6931472, %v1746_v18  ;;  %v1305_v25 = vpop.xlane.xlu0 %1304 }
 0x47b   :  { %1747 = vlog2.f32 %v1305_v25 }
 0x47c   :  { %v1362_v52 = vsub.f32 %v2358_v44, %v1335_v19 }
 0x47e   :  { %1378 = vst [vmem:[%s2478_s9 + $0x20] sm:$0xff] %v1362_v52 }
 0x481   :  { %v1748_v49 = vpop.eup %1747 }
 0x482   :  { %v1337_v53 = vmul.f32 0.6931472, %v1748_v49  ;;  %v1307_v27 = vpop.xlane.xlu1 %1306 }
 0x483   :  { %1749 = vlog2.f32 %v1307_v27 }
 0x484   :  { %v1363_v0 = vsub.f32 %v2362_v33, %v1337_v53 }
 0x486   :  { %1379 = vst [vmem:[%s2478_s9 + $0x28] sm:$0xff] %v1363_v0 }
 0x489   :  { %v1750_v55 = vpop.eup %1749 }
 0x48a   :  { %v1339_v59 = vmul.f32 0.6931472, %v1750_v55  ;;  %v1309_v31 = vpop.xlane.xlu2 %1308 }
 0x48b   :  { %1751 = vlog2.f32 %v1309_v31 }
 0x48c   :  { %v1364_v44 = vsub.f32 %v2366_v26, %v1339_v59 }
 0x48e   :  { %1380 = vst [vmem:[%s2478_s9 + $0x30] sm:$0xff] %v1364_v44 }
 0x491   :  { %v1752_v42 = vpop.eup %1751 }
 0x492   :  { %v1341_v47 = vmul.f32 0.6931472, %v1752_v42  ;;  %v1311_v21 = vpop.xlane.xlu0 %1310 }
 0x493   :  { %1753 = vlog2.f32 %v1311_v21 }
 0x494   :  { %v1365_v33 = vsub.f32 %v2370_v30, %v1341_v47 }
 0x496   :  { %1381 = vst [vmem:[%s2478_s9 + $0x38] sm:$0xff] %v1365_v33 }
 0x499   :  { %v1754_v10 = vpop.eup %1753 }
 0x49a   :  { %v1343_v7 = vmul.f32 0.6931472, %v1754_v10  ;;  %v1313_v11 = vpop.xlane.xlu1 %1312 }
 0x49b   :  { %1755 = vlog2.f32 %v1313_v11 }
 0x49c   :  { %v1366_v26 = vsub.f32 %v2374_v63, %v1343_v7 }
 0x49e   :  { %1382 = vst [vmem:[%s2478_s9 + $0x40] sm:$0xff] %v1366_v26 }
 0x4a1   :  { %v1756_v9 = vpop.eup %1755 }
 0x4a2   :  { %v1345_v36 = vmul.f32 0.6931472, %v1756_v9  ;;  %v1315_v17 = vpop.xlane.xlu2 %1314 }
 0x4a3   :  { %1757 = vlog2.f32 %v1315_v17 }
 0x4a4   :  { %v1367_v30 = vsub.f32 %v2378_v32, %v1345_v36 }
 0x4a6   :  { %1383 = vst [vmem:[%s2478_s9 + $0x48] sm:$0xff] %v1367_v30 }
 0x4a9   :  { %v1758_v15 = vpop.eup %1757 }
 0x4aa   :  { %v1347_v40 = vmul.f32 0.6931472, %v1758_v15  ;;  %v1317_v37 = vpop.xlane.xlu0 %1316 }
 0x4ab   :  { %1759 = vlog2.f32 %v1317_v37 }
 0x4ac   :  { %v1368_v63 = vsub.f32 %v2382_v35, %v1347_v40 }
 0x4ae   :  { %1384 = vst [vmem:[%s2478_s9 + $0x50] sm:$0xff] %v1368_v63 }
 0x4b1   :  { %v1760_v41 = vpop.eup %1759 }
 0x4b2   :  { %v1349_v46 = vmul.f32 0.6931472, %v1760_v41  ;;  %v1319_v50 = vpop.xlane.xlu1 %1318 }
 0x4b3   :  { %1761 = vlog2.f32 %v1319_v50 }
 0x4b4   :  { %v1369_v32 = vsub.f32 %v2386_v39, %v1349_v46 }
 0x4b6   :  { %1385 = vst [vmem:[%s2478_s9 + $0x58] sm:$0xff] %v1369_v32 }
 0x4b9   :  { %v1762_v57 = vpop.eup %1761 }
 0x4ba   :  { %v1351_v56 = vmul.f32 0.6931472, %v1762_v57  ;;  %v1321_v45 = vpop.xlane.xlu2 %1320 }
 0x4bb   :  { %1763 = vlog2.f32 %v1321_v45 }
 0x4bc   :  { %v1370_v35 = vsub.f32 %v2390_v43, %v1351_v56 }
 0x4be   :  { %1386 = vst [vmem:[%s2478_s9 + $0x60] sm:$0xff] %v1370_v35 }
 0x4c1   :  { %v1764_v14 = vpop.eup %1763 }
 0x4c2   :  { %v1353_v61 = vmul.f32 0.6931472, %v1764_v14  ;;  %v1323_v22 = vpop.xlane.xlu0 %1322 }
 0x4c3   :  { %1765 = vlog2.f32 %v1323_v22 }
 0x4c4   :  { %v1371_v39 = vsub.f32 %v2394_v62, %v1353_v61 }
 0x4c6   :  { %1387 = vst [vmem:[%s2478_s9 + $0x68] sm:$0xff] %v1371_v39 }
 0x4c9   :  { %v1766_v34 = vpop.eup %1765 }
 0x4ca   :  { %v1355_v1 = vmul.f32 0.6931472, %v1766_v34  ;;  %v1325_v2 = vpop.xlane.xlu1 %1324 }
 0x4cb   :  { %1767 = vlog2.f32 %v1325_v2 }
 0x4cc   :  { %v1372_v43 = vsub.f32 %v2398_v60, %v1355_v1 }
 0x4ce   :  { %1388 = vst [vmem:[%s2478_s9 + $0x70] sm:$0xff] %v1372_v43 }
 0x4d1   :  { %v1768_v12 = vpop.eup %1767 }
 0x4d2   :  { %v1357_v38 = vmul.f32 0.6931472, %v1768_v12 }
 0x4d4   :  { %v1373_v3 = vsub.f32 %v2402_v28, %v1357_v38 }
 0x4d6   :  { %1389 = vst [vmem:[%s2478_s9 + $0x78] sm:$0xff] %v1373_v3 }

</bundles_post_ra>
